<compile_context>
chip_gen: v5e
topology: v5e:2x2
jax: 0.10.0
libtpu: 0.0.40
codegen_flags: <defaults>
</compile_context>

<pallas_src>
import jax
import jax.numpy as jnp
from jax import lax
from jax.experimental import pallas as pl
from jax.experimental.pallas import tpu as pltpu


# ----------------------------------------------------------------------------
# Fused BasicBlock kernel. One grid step = (image group g, row-strip i).
# ----------------------------------------------------------------------------
def _basic_block_kernel(x_ref, m1_ref, m2_ref, s1_ref, b1_ref, s2_ref, b2_ref,
                        out_ref, xk3_ref, mid_ref):
    H = x_ref.shape[1]           # image rows
    L = x_ref.shape[2]           # P * W * Cin  (lane-dense, multiple of 128)
    Hs = out_ref.shape[1]        # output rows per strip
    Lm = s1_ref.shape[1]         # P * W * Cmid
    i = pl.program_id(1)

    # Build the K-concatenated, H-zero-padded input slab once per image group:
    #   xk3[q, dy*L:(dy+1)*L] = xpad[q + dy],  xpad = x with 1 zero row top/bot
    # Stored in bf16 (MXU operand dtype) and reused by every strip.
    @pl.when(i == 0)
    def _():
        xb = x_ref[0].astype(jnp.bfloat16)                     # (H, L)
        zr = jnp.zeros((2, L), jnp.bfloat16)
        xpad = jnp.concatenate([zr, xb, zr], axis=0)           # (H+4, L)
        xk3_ref[...] = jnp.concatenate(
            [xpad[0:H + 2, :], xpad[1:H + 3, :], xpad[2:H + 4, :]], axis=1)

    r0 = pl.multiple_of(i * Hs, Hs)     # first output row of this strip

    # ---- conv1 + BN1 + ReLU : ONE matmul, K = 3*L, lane-dense N = Lm --------
    # Produces mid rows q in [r0-1, r0+Hs+1)  (the 2-row fused halo).
    slab = xk3_ref[pl.ds(r0, Hs + 2), :]                       # (Hs+2, 3L) bf16
    mid = jnp.dot(slab, m1_ref[...], preferred_element_type=jnp.float32)
    mid = jnp.maximum(mid * s1_ref[...] + b1_ref[...], 0.0)
    mid_ref[...] = mid.astype(jnp.bfloat16)

    # conv2's H zero-padding: only boundary strips contain out-of-image rows.
    @pl.when(i == 0)
    def _():
        mid_ref[0:1, :] = jnp.zeros((1, Lm), jnp.bfloat16)

    @pl.when(i == pl.num_programs(1) - 1)
    def _():
        mid_ref[Hs + 1:Hs + 2, :] = jnp.zeros((1, Lm), jnp.bfloat16)

    # ---- conv2 + BN2 + residual + ReLU : ONE matmul, K = 3*Lm ---------------
    mid3 = jnp.concatenate(
        [mid_ref[0:Hs, :], mid_ref[1:Hs + 1, :], mid_ref[2:Hs + 2, :]], axis=1)
    acc = jnp.dot(mid3, m2_ref[...], preferred_element_type=jnp.float32)
    acc = acc * s2_ref[...] + b2_ref[...]
    acc = acc + x_ref[0, pl.ds(r0, Hs), :]     # residual from f32 x in VMEM
    out_ref[0] = jnp.maximum(acc, 0.0).astype(out_ref.dtype)


# ----------------------------------------------------------------------------
# Width-Toeplitz weight matrices: fold the 3 horizontal taps + 'same' W-padding
# of a 3x3 conv into three (W*Cin, W*Cout) matrices (one per vertical tap dy).
#   M[dy, w_in*Cin+ci, w_out*Cout+co] = w[dy, w_in-w_out+1, ci, co]  (if valid)
# ----------------------------------------------------------------------------
def _toeplitz_weights(w_hwio, W):
    _, _, Cin, Cout = w_hwio.shape
    win = jnp.arange(W)[:, None]              # (W, 1)  input column
    wout = jnp.arange(W)[None, :]             # (1, W)  output column
    dx = win - wout + 1                       # (W, W)
    valid = ((dx >= 0) & (dx < 3)).astype(w_hwio.dtype)
    dx_c = jnp.clip(dx, 0, 2)
    m = w_hwio[:, dx_c, :, :] * valid[None, :, :, None, None]   # (3,W,W,Cin,Cout)
    m = jnp.transpose(m, (0, 1, 3, 2, 4))                       # (3,W,Cin,W,Cout)
    return m.reshape(3, W * Cin, W * Cout)


def _pack_weights(m3, P):
    """Block-diagonal over the P lane-packed images, then K-concatenate the
    3 vertical taps: (3, K, N) -> (3*P*K, P*N) bf16."""
    _, K, Nn = m3.shape
    eye = jnp.eye(P, dtype=m3.dtype)
    mp = jnp.einsum("pq,dkn->dpkqn", eye, m3).reshape(3, P * K, P * Nn)
    return mp.reshape(3 * P * K, P * Nn).astype(jnp.bfloat16)


# ----------------------------------------------------------------------------
# BasicBlock forward (wrapper: layout plumbing only — no padding, no HBM
# round-trip of the intermediate activation).
# ----------------------------------------------------------------------------
def basic_block_forward(x_nchw, params, *, row_strip=None):
    N, Cin, H, W = x_nchw.shape
    w1, w2 = params["w1"], params["w2"]        # HWIO: (3,3,Cin,Cmid), (3,3,Cmid,Cout)
    Cmid, Cout = w1.shape[-1], w2.shape[-1]
    assert Cin == Cout, "residual add requires inplanes == planes (downsample=None)"

    # Lane-packing factor: pack P images side-by-side so the flattened lane
    # dimension P*W*C becomes a multiple of 128 (lane-dense vregs, unmasked
    # output stores). Falls back to P=1 if no divisor of N works.
    P = 1
    if (W * Cin) % 128 != 0:
        for cand in range(2, N + 1):
            if N % cand == 0 and (cand * W * Cin) % 128 == 0:
                P = cand
                break
    G = N // P
    L, Lm, Lo = P * W * Cin, P * W * Cmid, P * W * Cout

    # NCHW (PyTorch) -> NHWC -> (G, H, P*W*C): P images packed along lanes.
    x = jnp.transpose(x_nchw, (0, 2, 3, 1)).reshape(N, H, W * Cin)
    x = x.reshape(G, P, H, W * Cin).transpose(0, 2, 1, 3).reshape(G, H, L)

    # Row strips: default = whole image per step (maximizes MXU M, S = 1).
    Hs = row_strip if (row_strip is not None and H % row_strip == 0) else H
    S = H // Hs

    # Block-diagonal width-Toeplitz weights (bf16), K-concatenated over dy,
    # and BN folded scale/bias tiled across (P*W) so they broadcast over the
    # flattened lane axis (channel-fastest order).
    m1 = _pack_weights(_toeplitz_weights(w1, W), P)   # (3*L,  Lm)
    m2 = _pack_weights(_toeplitz_weights(w2, W), P)   # (3*Lm, Lo)
    s1 = jnp.tile(params["scale1"], P * W).reshape(1, Lm)
    b1 = jnp.tile(params["bias1"], P * W).reshape(1, Lm)
    s2 = jnp.tile(params["scale2"], P * W).reshape(1, Lo)
    b2 = jnp.tile(params["bias2"], P * W).reshape(1, Lo)

    out2d = pl.pallas_call(
        _basic_block_kernel,
        out_shape=jax.ShapeDtypeStruct((G, H, Lo), jnp.float32),
        grid=(G, S),
        in_specs=[
            pl.BlockSpec((1, H, L), lambda g, i: (g, 0, 0)),
            pl.BlockSpec((3 * L, Lm), lambda g, i: (0, 0)),
            pl.BlockSpec((3 * Lm, Lo), lambda g, i: (0, 0)),
            pl.BlockSpec((1, Lm), lambda g, i: (0, 0)),
            pl.BlockSpec((1, Lm), lambda g, i: (0, 0)),
            pl.BlockSpec((1, Lo), lambda g, i: (0, 0)),
            pl.BlockSpec((1, Lo), lambda g, i: (0, 0)),
        ],
        out_specs=pl.BlockSpec((1, Hs, Lo), lambda g, i: (g, i, 0)),
        scratch_shapes=[
            pltpu.VMEM((H + 2, 3 * L), jnp.bfloat16),   # K-concat padded input
            pltpu.VMEM((Hs + 2, Lm), jnp.bfloat16),     # conv1 output (+ halo)
        ],
        compiler_params=pltpu.CompilerParams(
            dimension_semantics=("parallel", "arbitrary"),
        ),
    )(x, m1, m2, s1, b1, s2, b2)

    # (G, H, P*W*Cout) -> unpack lanes -> NHWC -> NCHW (PyTorch layout)
    out = (out2d.reshape(G, H, P, W * Cout).transpose(0, 2, 1, 3)
                 .reshape(N, H, W, Cout))
    return jnp.transpose(out, (0, 3, 1, 2))


# ----------------------------------------------------------------------------
# Pure-JAX reference (for correctness check).
# ----------------------------------------------------------------------------
def basic_block_reference(x_nchw, params):
    x = jnp.transpose(x_nchw, (0, 2, 3, 1))
    dn = ("NHWC", "HWIO", "NHWC")

    def conv(v, w):
        return lax.conv_general_dilated(v, w, (1, 1), "SAME", dimension_numbers=dn)

    out = conv(x, params["w1"]) * params["scale1"] + params["bias1"]
    out = jnp.maximum(out, 0.0)
    out = conv(out, params["w2"]) * params["scale2"] + params["bias2"]
    out = out + x
    out = jnp.maximum(out, 0.0)
    return jnp.transpose(out, (0, 3, 1, 2))


# ----------------------------------------------------------------------------
# Deterministic parameter init (shapes from BasicBlock(inplanes=C, planes=C)).
# ----------------------------------------------------------------------------
def init_params(key, inplanes, planes, eps=1e-5):
    ks = jax.random.split(key, 10)
    # PyTorch conv weight layout is (Cout, Cin, 3, 3); store as HWIO.
    w1_oihw = jax.random.normal(ks[0], (planes, inplanes, 3, 3), jnp.float32) * 0.1
    w2_oihw = jax.random.normal(ks[1], (planes, planes, 3, 3), jnp.float32) * 0.1
    w1 = jnp.transpose(w1_oihw, (2, 3, 1, 0))
    w2 = jnp.transpose(w2_oihw, (2, 3, 1, 0))

    def bn_fold(kg, kb, km, kv, c):
        gamma = 1.0 + 0.1 * jax.random.normal(kg, (c,), jnp.float32)
        beta = 0.1 * jax.random.normal(kb, (c,), jnp.float32)
        mean = 0.1 * jax.random.normal(km, (c,), jnp.float32)
        var = jnp.abs(1.0 + 0.1 * jax.random.normal(kv, (c,), jnp.float32))
        scale = gamma / jnp.sqrt(var + eps)
        bias = beta - mean * scale
        return scale, bias

    scale1, bias1 = bn_fold(ks[2], ks[3], ks[4], ks[5], planes)
    scale2, bias2 = bn_fold(ks[6], ks[7], ks[8], ks[9], planes)

    return dict(w1=w1, w2=w2, scale1=scale1, bias1=bias1,
                scale2=scale2, bias2=bias2)


if __name__ == "__main__":
    key = jax.random.PRNGKey(0)
    k_x, k_p = jax.random.split(key)

    N, C, H, W = 2, 4, 16, 16            # inplanes = planes = 4, stride = 1
    x = jax.random.normal(k_x, (N, C, H, W), jnp.float32)
    params = init_params(k_p, inplanes=C, planes=C)

    fwd = jax.jit(basic_block_forward)
    out = jax.block_until_ready(fwd(x, params))
    ref = jax.block_until_ready(basic_block_reference(x, params))

    assert out.shape == (N, C, H, W)
    max_err = float(jnp.max(jnp.abs(out - ref)))
    assert jnp.allclose(out, ref, atol=3e-2, rtol=3e-2), \
        f"mismatch vs reference (max abs err {max_err})"

    print("KERNEL_OK")
</pallas_src>

<mosaic_0001>
module attributes {stable_mosaic.version = 11 : i64} {
  func.func @_basic_block_kernel(%arg0: i32, %arg1: i32, %arg2: memref<1x16x128xf32, #tpu.memory_space<vmem>>, %arg3: memref<384x128xbf16, #tpu.memory_space<vmem>>, %arg4: memref<384x128xbf16, #tpu.memory_space<vmem>>, %arg5: memref<1x128xf32, #tpu.memory_space<vmem>>, %arg6: memref<1x128xf32, #tpu.memory_space<vmem>>, %arg7: memref<1x128xf32, #tpu.memory_space<vmem>>, %arg8: memref<1x128xf32, #tpu.memory_space<vmem>>, %arg9: memref<1x16x128xf32, #tpu.memory_space<vmem>>, %arg10: memref<18x384xbf16, #tpu.memory_space<vmem>>, %arg11: memref<18x128xbf16, #tpu.memory_space<vmem>>) attributes {dimension_semantics = [#tpu.dimension_semantics<parallel>, #tpu.dimension_semantics<arbitrary>], iteration_bounds = array<i64: 1, 1>, scalar_prefetch = 0 : i64, scratch_operands = 2 : i64, tpu.core_type = #tpu.core_type<tc>, window_params = [{transform_indices = @transform_0, window_bounds = array<i64: 1, 16, 128>}, {pipeline_mode = #tpu.pipeline_mode<synchronous>, transform_indices = @transform_1, window_bounds = array<i64: 384, 128>}, {pipeline_mode = #tpu.pipeline_mode<synchronous>, transform_indices = @transform_2, window_bounds = array<i64: 384, 128>}, {pipeline_mode = #tpu.pipeline_mode<synchronous>, transform_indices = @transform_3, window_bounds = array<i64: 1, 128>}, {pipeline_mode = #tpu.pipeline_mode<synchronous>, transform_indices = @transform_4, window_bounds = array<i64: 1, 128>}, {pipeline_mode = #tpu.pipeline_mode<synchronous>, transform_indices = @transform_5, window_bounds = array<i64: 1, 128>}, {pipeline_mode = #tpu.pipeline_mode<synchronous>, transform_indices = @transform_6, window_bounds = array<i64: 1, 128>}, {transform_indices = @transform_7, window_bounds = array<i64: 1, 16, 128>}]} {
    %c0_i32 = arith.constant 0 : i32
    %0 = arith.cmpi eq, %arg1, %c0_i32 : i32
    %1 = arith.extui %0 : i1 to i32
    %c0_i32_0 = arith.constant 0 : i32
    %2 = arith.cmpi ne, %1, %c0_i32_0 : i32
    scf.if %2 {
      %c0_31 = arith.constant 0 : index
      %c0_32 = arith.constant 0 : index
      %c0_33 = arith.constant 0 : index
      %46 = vector.load %arg2[%c0_31, %c0_32, %c0_33] : memref<1x16x128xf32, #tpu.memory_space<vmem>>, vector<1x16x128xf32>
      %47 = vector.shape_cast %46 : vector<1x16x128xf32> to vector<16x128xf32>
      %48 = arith.truncf %47 : vector<16x128xf32> to vector<16x128xbf16>
      %cst_34 = arith.constant 0.000000e+00 : bf16
      %49 = vector.broadcast %cst_34 : bf16 to vector<2x128xbf16>
      %50 = tpu.concatenate %49, %48, %49 in 0 : vector<2x128xbf16>, vector<16x128xbf16>, vector<2x128xbf16> -> vector<20x128xbf16>
      %51 = vector.extract_strided_slice %50 {offsets = [0, 0], sizes = [18, 128], strides = [1, 1]} : vector<20x128xbf16> to vector<18x128xbf16>
      %52 = vector.extract_strided_slice %50 {offsets = [1, 0], sizes = [18, 128], strides = [1, 1]} : vector<20x128xbf16> to vector<18x128xbf16>
      %53 = vector.extract_strided_slice %50 {offsets = [2, 0], sizes = [18, 128], strides = [1, 1]} : vector<20x128xbf16> to vector<18x128xbf16>
      %54 = tpu.concatenate %51, %52, %53 in 1 : vector<18x128xbf16>, vector<18x128xbf16>, vector<18x128xbf16> -> vector<18x384xbf16>
      %c0_35 = arith.constant 0 : index
      %c0_36 = arith.constant 0 : index
      %55 = vector.load %arg10[%c0_35, %c0_36] : memref<18x384xbf16, #tpu.memory_space<vmem>>, vector<18x384xbf16>
      tpu.vector_store %arg10[%c0_35, %c0_36], %54 {strides = array<i32>} : memref<18x384xbf16, #tpu.memory_space<vmem>>, vector<18x384xbf16>,
    } else {
    }
    %c16_i32 = arith.constant 16 : i32
    %3 = arith.muli %arg1, %c16_i32 : i32
    %4 = tpu.assume_multiple %3, 16 : i32
    %5 = arith.index_cast %4 : i32 to index
    %c0 = arith.constant 0 : index
    %6 = vector.load %arg10[%5, %c0] : memref<18x384xbf16, #tpu.memory_space<vmem>>, vector<18x384xbf16>
    %c0_1 = arith.constant 0 : index
    %c0_2 = arith.constant 0 : index
    %7 = vector.load %arg3[%c0_1, %c0_2] : memref<384x128xbf16, #tpu.memory_space<vmem>>, vector<384x128xbf16>
    %cst = arith.constant dense<0.000000e+00> : vector<18x128xf32>
    %8 = tpu.matmul %6, %7, %cst {dimension_numbers = #tpu.dot_dimension_numbers<[1], [0], [0], [1], [0, 0, 1, 1], [], []>} : vector<18x384xbf16>, vector<384x128xbf16>, vector<18x128xf32> -> vector<18x128xf32>
    %c0_3 = arith.constant 0 : index
    %c0_4 = arith.constant 0 : index
    %9 = vector.load %arg5[%c0_3, %c0_4] : memref<1x128xf32, #tpu.memory_space<vmem>>, vector<1x128xf32>
    %10 = vector.broadcast %9 : vector<1x128xf32> to vector<18x128xf32>
    %11 = arith.mulf %8, %10 : vector<18x128xf32>
    %c0_5 = arith.constant 0 : index
    %c0_6 = arith.constant 0 : index
    %12 = vector.load %arg6[%c0_5, %c0_6] : memref<1x128xf32, #tpu.memory_space<vmem>>, vector<1x128xf32>
    %13 = vector.broadcast %12 : vector<1x128xf32> to vector<18x128xf32>
    %14 = arith.addf %11, %13 : vector<18x128xf32>
    %cst_7 = arith.constant 0.000000e+00 : f32
    %15 = vector.broadcast %cst_7 : f32 to vector<18x128xf32>
    %16 = arith.maximumf %14, %15 : vector<18x128xf32>
    %17 = arith.truncf %16 : vector<18x128xf32> to vector<18x128xbf16>
    %c0_8 = arith.constant 0 : index
    %c0_9 = arith.constant 0 : index
    %18 = vector.load %arg11[%c0_8, %c0_9] : memref<18x128xbf16, #tpu.memory_space<vmem>>, vector<18x128xbf16>
    tpu.vector_store %arg11[%c0_8, %c0_9], %17 {strides = array<i32>} : memref<18x128xbf16, #tpu.memory_space<vmem>>, vector<18x128xbf16>,
    %c0_i32_10 = arith.constant 0 : i32
    %19 = arith.cmpi eq, %arg1, %c0_i32_10 : i32
    %20 = arith.extui %19 : i1 to i32
    %c0_i32_11 = arith.constant 0 : i32
    %21 = arith.cmpi ne, %20, %c0_i32_11 : i32
    scf.if %21 {
      %cst_31 = arith.constant 0.000000e+00 : bf16
      %46 = vector.broadcast %cst_31 : bf16 to vector<1x128xbf16>
      %c0_32 = arith.constant 0 : index
      %c0_33 = arith.constant 0 : index
      %47 = vector.load %arg11[%c0_32, %c0_33] : memref<18x128xbf16, #tpu.memory_space<vmem>>, vector<1x128xbf16>
      tpu.vector_store %arg11[%c0_32, %c0_33], %46 {strides = array<i32>} : memref<18x128xbf16, #tpu.memory_space<vmem>>, vector<1x128xbf16>,
    } else {
    }
    %c0_i32_12 = arith.constant 0 : i32
    %22 = arith.cmpi eq, %arg1, %c0_i32_12 : i32
    %23 = arith.extui %22 : i1 to i32
    %c0_i32_13 = arith.constant 0 : i32
    %24 = arith.cmpi ne, %23, %c0_i32_13 : i32
    scf.if %24 {
      %cst_31 = arith.constant 0.000000e+00 : bf16
      %46 = vector.broadcast %cst_31 : bf16 to vector<1x128xbf16>
      %c17 = arith.constant 17 : index
      %c0_32 = arith.constant 0 : index
      %47 = vector.load %arg11[%c17, %c0_32] : memref<18x128xbf16, #tpu.memory_space<vmem>>, vector<1x128xbf16>
      tpu.vector_store %arg11[%c17, %c0_32], %46 {strides = array<i32>} : memref<18x128xbf16, #tpu.memory_space<vmem>>, vector<1x128xbf16>,
    } else {
    }
    %c0_14 = arith.constant 0 : index
    %c0_15 = arith.constant 0 : index
    %25 = vector.load %arg11[%c0_14, %c0_15] : memref<18x128xbf16, #tpu.memory_space<vmem>>, vector<16x128xbf16>
    %c1 = arith.constant 1 : index
    %c0_16 = arith.constant 0 : index
    %26 = vector.load %arg11[%c1, %c0_16] : memref<18x128xbf16, #tpu.memory_space<vmem>>, vector<16x128xbf16>
    %c2 = arith.constant 2 : index
    %c0_17 = arith.constant 0 : index
    %27 = vector.load %arg11[%c2, %c0_17] : memref<18x128xbf16, #tpu.memory_space<vmem>>, vector<16x128xbf16>
    %28 = tpu.concatenate %25, %26, %27 in 1 : vector<16x128xbf16>, vector<16x128xbf16>, vector<16x128xbf16> -> vector<16x384xbf16>
    %c0_18 = arith.constant 0 : index
    %c0_19 = arith.constant 0 : index
    %29 = vector.load %arg4[%c0_18, %c0_19] : memref<384x128xbf16, #tpu.memory_space<vmem>>, vector<384x128xbf16>
    %cst_20 = arith.constant dense<0.000000e+00> : vector<16x128xf32>
    %30 = tpu.matmul %28, %29, %cst_20 {dimension_numbers = #tpu.dot_dimension_numbers<[1], [0], [0], [1], [0, 0, 1, 1], [], []>} : vector<16x384xbf16>, vector<384x128xbf16>, vector<16x128xf32> -> vector<16x128xf32>
    %c0_21 = arith.constant 0 : index
    %c0_22 = arith.constant 0 : index
    %31 = vector.load %arg7[%c0_21, %c0_22] : memref<1x128xf32, #tpu.memory_space<vmem>>, vector<1x128xf32>
    %32 = vector.broadcast %31 : vector<1x128xf32> to vector<16x128xf32>
    %33 = arith.mulf %30, %32 : vector<16x128xf32>
    %c0_23 = arith.constant 0 : index
    %c0_24 = arith.constant 0 : index
    %34 = vector.load %arg8[%c0_23, %c0_24] : memref<1x128xf32, #tpu.memory_space<vmem>>, vector<1x128xf32>
    %35 = vector.broadcast %34 : vector<1x128xf32> to vector<16x128xf32>
    %36 = arith.addf %33, %35 : vector<16x128xf32>
    %c0_25 = arith.constant 0 : index
    %37 = arith.index_cast %4 : i32 to index
    %c0_26 = arith.constant 0 : index
    %38 = vector.load %arg2[%c0_25, %37, %c0_26] : memref<1x16x128xf32, #tpu.memory_space<vmem>>, vector<1x16x128xf32>
    %39 = vector.shape_cast %38 : vector<1x16x128xf32> to vector<16x128xf32>
    %40 = arith.addf %36, %39 : vector<16x128xf32>
    %cst_27 = arith.constant 0.000000e+00 : f32
    %41 = vector.broadcast %cst_27 : f32 to vector<16x128xf32>
    %42 = arith.maximumf %40, %41 : vector<16x128xf32>
    %c0_28 = arith.constant 0 : index
    %c0_29 = arith.constant 0 : index
    %c0_30 = arith.constant 0 : index
    %43 = vector.load %arg9[%c0_28, %c0_29, %c0_30] : memref<1x16x128xf32, #tpu.memory_space<vmem>>, vector<1x16x128xf32>
    %44 = vector.shape_cast %43 : vector<1x16x128xf32> to vector<16x128xf32>
    %45 = vector.shape_cast %42 : vector<16x128xf32> to vector<1x16x128xf32>
    tpu.vector_store %arg9[%c0_28, %c0_29, %c0_30], %45 {strides = array<i32>} : memref<1x16x128xf32, #tpu.memory_space<vmem>>, vector<1x16x128xf32>,
    return
  }
  func.func @transform_0(%arg0: i32, %arg1: i32) -> (i32, i32, i32) {
    %c0_i32 = arith.constant 0 : i32
    %c0_i32_0 = arith.constant 0 : i32
    %c0_i32_1 = arith.constant 0 : i32
    return %arg0, %c0_i32, %c0_i32_0 : i32, i32, i32
  }
  func.func @transform_1(%arg0: i32, %arg1: i32) -> (i32, i32) {
    %c0_i32 = arith.constant 0 : i32
    %c0_i32_0 = arith.constant 0 : i32
    %c0_i32_1 = arith.constant 0 : i32
    return %c0_i32, %c0_i32_0 : i32, i32
  }
  func.func @transform_2(%arg0: i32, %arg1: i32) -> (i32, i32) {
    %c0_i32 = arith.constant 0 : i32
    %c0_i32_0 = arith.constant 0 : i32
    %c0_i32_1 = arith.constant 0 : i32
    return %c0_i32, %c0_i32_0 : i32, i32
  }
  func.func @transform_3(%arg0: i32, %arg1: i32) -> (i32, i32) {
    %c0_i32 = arith.constant 0 : i32
    %c0_i32_0 = arith.constant 0 : i32
    %c0_i32_1 = arith.constant 0 : i32
    return %c0_i32, %c0_i32_0 : i32, i32
  }
  func.func @transform_4(%arg0: i32, %arg1: i32) -> (i32, i32) {
    %c0_i32 = arith.constant 0 : i32
    %c0_i32_0 = arith.constant 0 : i32
    %c0_i32_1 = arith.constant 0 : i32
    return %c0_i32, %c0_i32_0 : i32, i32
  }
  func.func @transform_5(%arg0: i32, %arg1: i32) -> (i32, i32) {
    %c0_i32 = arith.constant 0 : i32
    %c0_i32_0 = arith.constant 0 : i32
    %c0_i32_1 = arith.constant 0 : i32
    return %c0_i32, %c0_i32_0 : i32, i32
  }
  func.func @transform_6(%arg0: i32, %arg1: i32) -> (i32, i32) {
    %c0_i32 = arith.constant 0 : i32
    %c0_i32_0 = arith.constant 0 : i32
    %c0_i32_1 = arith.constant 0 : i32
    return %c0_i32, %c0_i32_0 : i32, i32
  }
  func.func @transform_7(%arg0: i32, %arg1: i32) -> (i32, i32, i32) {
    %c0_i32 = arith.constant 0 : i32
    %c0_i32_0 = arith.constant 0 : i32
    return %arg0, %arg1, %c0_i32 : i32, i32, i32
  }
}

</mosaic_0001>

<bundles_post_ra>
// kernel: tile.23
= control target key start
LH: loop header
LB: loop body
LE: loop exit
PB: predicated region body
PF: predicated region fallthrough
CT: control target
= control target key end

     0   :  { %s40_s0 = inlined_call_operand.vmem [shape: f32[4], index: 0, kind: input, shape index: {}]   ;;  %s41_s1 = inlined_call_operand.vmem [shape: f32[32,4], index: 1, kind: output, shape index: {}]  }
   0x1   :  { %v4_v0 = vld [vmem:[%s40_s0] ss:$0 sm:$0xff] }
   0x2   :  { %5 = vst [vmem:[%s41_s1] sm:$0xff] %v4_v0 }
   0x3   :  { %12 = vst [vmem:[%s41_s1 + $0x8] sm:$0xff] %v4_v0 }
   0x4   :  { %13 = vst [vmem:[%s41_s1 + $0x10] sm:$0xff] %v4_v0 }
   0x5   :  { %14 = vst [vmem:[%s41_s1 + $0x18] sm:$0xff] %v4_v0 }

// kernel: tile.24
= control target key start
LH: loop header
LB: loop body
LE: loop exit
PB: predicated region body
PF: predicated region fallthrough
CT: control target
= control target key end

     0   :  { %s259_s10 = smov 124   ;;  %s260_s11 = smov 116   ;;  %vm3_vm0 = vcmask 31744   ;;  %vm9_vm1 = vcmask 1048544   ;;  %vm15_vm2 = vcmask 1015744   ;;  %vm21_vm3 = vcmask 982944   ;;  %s399_s0 = inlined_call_operand.vmem [shape: f32[32,4], index: 0, kind: input, shape index: {}]   ;;  %s400_s1 = inlined_call_operand.vmem [shape: f32[1,128], index: 1, kind: output, shape index: {}]  }
   0x1   :  { %v197_v0 = vld [vmem:[%s399_s0 + $0x1f] sm:$0x1]   ;;  %v199_v1 = vld [vmem:[%s399_s0 + $0x1d] sm:$0x1]   ;;  %v201_v2 = vld [vmem:[%s399_s0 + $0x1b] sm:$0x1]  }
   0x2   :  { %7 = vrot.lane.b32.xlu0 %v197_v0, %s259_s10  ;;  %19 = vrot.lane.b32.xlu1 %v199_v1, %s260_s11  ;;  %s261_s14 = smov 108   ;;  %v198_v3 = vld [vmem:[%s399_s0 + $0x1e] sm:$0x1]   ;;  %v200_v4 = vld [vmem:[%s399_s0 + $0x1c] sm:$0x1]   ;;  %s262_s19 = smov 120  }
   0x3   :  { %31 = vrot.lane.b32.xlu2 %v201_v2, %s261_s14  ;;  %s263_s20 = smov 112   ;;  %v202_v5 = vld [vmem:[%s399_s0 + $0x1a] sm:$0x1]   ;;  %s264_s23 = smov 104   ;;  %v203_v6 = vld [vmem:[%s399_s0 + $0x19] sm:$0x1]  }
   0x4   :  { %v204_v7 = vld [vmem:[%s399_s0 + $0x18] sm:$0x1]   ;;  %s265_s28 = smov 100   ;;  %s266_s29 = smov 96   ;;  %v205_v8 = vld [vmem:[%s399_s0 + $0x17] sm:$0x1]  }
   0x5   :  { %s267_s3 = smov 92   ;;  %v206_v9 = vld [vmem:[%s399_s0 + $0x16] sm:$0x1]   ;;  %v207_v10 = vld [vmem:[%s399_s0 + $0x15] sm:$0x1]   ;;  %s268_s8 = smov 88  }
   0x6   :  { %s269_s9 = smov 84   ;;  %v208_v11 = vld [vmem:[%s399_s0 + $0x14] sm:$0x1]   ;;  %s270_s12 = smov 80   ;;  %v209_v12 = vld [vmem:[%s399_s0 + $0x13] sm:$0x1]  }
   0x7   :  { %v210_v13 = vld [vmem:[%s399_s0 + $0x12] sm:$0x1]   ;;  %s271_s17 = smov 76   ;;  %s272_s18 = smov 72   ;;  %v211_v14 = vld [vmem:[%s399_s0 + $0x11] sm:$0x1]  }
   0x8   :  { %s273_s21 = smov 68   ;;  %v212_v15 = vld [vmem:[%s399_s0 + $0x10] sm:$0x1]   ;;  %v213_v16 = vld [vmem:[%s399_s0 + $0xf] sm:$0x1]   ;;  %s274_s26 = smov 64  }
   0x9   :  { %s275_s27 = smov 60   ;;  %v214_v17 = vld [vmem:[%s399_s0 + $0xe] sm:$0x1]   ;;  %s276_s30 = smov 56   ;;  %v215_v18 = vld [vmem:[%s399_s0 + $0xd] sm:$0x1]  }
   0xa   :  { %13 = vrot.lane.b32.xlu0 %v198_v3, %s262_s19  ;;  %25 = vrot.lane.b32.xlu1 %v200_v4, %s263_s20  ;;  %v216_v19 = vld [vmem:[%s399_s0 + $0xc] sm:$0x1]   ;;  %s277_s6 = smov 52   ;;  %s278_s7 = smov 48   ;;  %v217_v20 = vld [vmem:[%s399_s0 + $0xb] sm:$0x1]  }
   0xb   :  { %37 = vrot.lane.b32.xlu2 %v202_v5, %s264_s23  ;;  %s279_s10 = smov 44   ;;  %v218_v21 = vld [vmem:[%s399_s0 + $0xa] sm:$0x1]   ;;  %v219_v22 = vld [vmem:[%s399_s0 + $0x9] sm:$0x1]   ;;  %s280_s15 = smov 40  }
   0xc   :  { %s281_s16 = smov 36   ;;  %v220_v23 = vld [vmem:[%s399_s0 + $0x8] sm:$0x1]   ;;  %s282_s19 = smov 32   ;;  %v221_v24 = vld [vmem:[%s399_s0 + $0x7] sm:$0x1]  }
   0xd   :  { %v222_v25 = vld [vmem:[%s399_s0 + $0x6] sm:$0x1]   ;;  %s283_s24 = smov 28   ;;  %s284_s25 = smov 24   ;;  %v223_v26 = vld [vmem:[%s399_s0 + $0x5] sm:$0x1]  }
   0xe   :  { %v224_v27 = vld [vmem:[%s399_s0 + $0x4] sm:$0x1]   ;;  %v225_v28 = vld [vmem:[%s399_s0 + $0x3] sm:$0x1]   ;;  %s286_s4 = smov 16   ;;  %s287_s5 = smov 12  }
   0xf   :  { %v226_v29 = vld [vmem:[%s399_s0 + $0x2] sm:$0x1]   ;;  %v227_v30 = vld [vmem:[%s399_s0 + $0x1] sm:$0x1]   ;;  %s289_s11 = smov 4   ;;  %vm27_vm4 = vcmask 950144  }
  0x10   :  { %v2_v31 = vld [vmem:[%s399_s0] sm:$0x1]   ;;  %vm33_vm5 = vcmask 917344   ;;  %vm39_vm6 = vcmask 884544   ;;  %vm45_vm7 = vcmask 851744   ;;  %vm51_vm8 = vcmask 818944  }
  0x11   :  { %4 = vst.msk [vmem:[#allocation0] sm:$0x1] %vm3_vm0, %v2_v31   ;;  %vm57_vm9 = vcmask 786144   ;;  %vm63_vm10 = vcmask 753344   ;;  %vm69_vm11 = vcmask 720544   ;;  %vm75_vm12 = vcmask 687744  }
  0x12   :  { %43 = vrot.lane.b32.xlu0 %v203_v6, %s265_s28  ;;  %49 = vrot.lane.b32.xlu1 %v204_v7, %s266_s29  ;;  %s285_s28 = smov 20   ;;  %vm81_vm13 = vcmask 654944   ;;  %vm87_vm14 = vcmask 622144   ;;  %vm93_vm15 = vcmask 589344   ;;  %vm99_vm0 = vcmask 556544  }
  0x13   :  { %55 = vrot.lane.b32.xlu2 %v205_v8, %s267_s3 }
  0x1a   :  { %61 = vrot.lane.b32.xlu0 %v206_v9, %s268_s8  ;;  %67 = vrot.lane.b32.xlu1 %v207_v10, %s269_s9  ;;  %s288_s8 = smov 8  }
  0x1b   :  { %73 = vrot.lane.b32.xlu2 %v208_v11, %s270_s12 }
  0x22   :  { %79 = vrot.lane.b32.xlu0 %v209_v12, %s271_s17  ;;  %85 = vrot.lane.b32.xlu1 %v210_v13, %s272_s18 }
  0x23   :  { %91 = vrot.lane.b32.xlu2 %v211_v14, %s273_s21 }
  0x2a   :  { %97 = vrot.lane.b32.xlu0 %v212_v15, %s274_s26  ;;  %103 = vrot.lane.b32.xlu1 %v213_v16, %s275_s27 }
  0x2b   :  { %109 = vrot.lane.b32.xlu2 %v214_v17, %s276_s30 }
  0x32   :  { %115 = vrot.lane.b32.xlu0 %v215_v18, %s277_s6  ;;  %121 = vrot.lane.b32.xlu1 %v216_v19, %s278_s7 }
  0x33   :  { %127 = vrot.lane.b32.xlu2 %v217_v20, %s279_s10 }
  0x3a   :  { %133 = vrot.lane.b32.xlu0 %v218_v21, %s280_s15  ;;  %139 = vrot.lane.b32.xlu1 %v219_v22, %s281_s16 }
  0x3b   :  { %145 = vrot.lane.b32.xlu2 %v220_v23, %s282_s19 }
  0x42   :  { %151 = vrot.lane.b32.xlu0 %v221_v24, %s283_s24  ;;  %157 = vrot.lane.b32.xlu1 %v222_v25, %s284_s25 }
  0x43   :  { %163 = vrot.lane.b32.xlu2 %v223_v26, %s285_s28 }
  0x4a   :  { %169 = vrot.lane.b32.xlu0 %v224_v27, %s286_s4  ;;  %175 = vrot.lane.b32.xlu1 %v225_v28, %s287_s5 }
  0x4b   :  { %181 = vrot.lane.b32.xlu2 %v226_v29, %s288_s8 }
  0x52   :  { %187 = vrot.lane.b32.xlu0 %v227_v30, %s289_s11 }
  0x5d   :  { %v32_v32 = vpop.permute.xlu2 %31  }
  0x65   :  { %v38_v33 = vpop.permute.xlu2 %37  }
  0x6d   :  { %v56_v34 = vpop.permute.xlu2 %55  }
  0x74   :  { %v8_v35 = vpop.permute.xlu0 %7   ;;  %v20_v36 = vpop.permute.xlu1 %19  }
  0x75   :  { %10 = vst.msk [vmem:[#allocation0] sm:$0x1] %vm9_vm1, %v8_v35   ;;  %v74_v37 = vpop.permute.xlu2 %73   ;;  %vm105_vm1 = vcmask 523744  }
  0x7c   :  { %v14_v38 = vpop.permute.xlu0 %13   ;;  %v26_v39 = vpop.permute.xlu1 %25  }
  0x7d   :  { %16 = vst.msk [vmem:[#allocation0] sm:$0x1] %vm15_vm2, %v14_v38   ;;  %v92_v40 = vpop.permute.xlu2 %91   ;;  %vm111_vm2 = vcmask 490944  }
  0x7e   :  { %22 = vst.msk [vmem:[#allocation0] sm:$0x1] %vm21_vm3, %v20_v36   ;;  %vm117_vm3 = vcmask 458144  }
  0x7f   :  { %28 = vst.msk [vmem:[#allocation0] sm:$0x1] %vm27_vm4, %v26_v39   ;;  %vm123_vm4 = vcmask 425344  }
  0x80   :  { %34 = vst.msk [vmem:[#allocation0] sm:$0x1] %vm33_vm5, %v32_v32   ;;  %vm129_vm5 = vcmask 392544  }
  0x81   :  { %40 = vst.msk [vmem:[#allocation0] sm:$0x1] %vm39_vm6, %v38_v33   ;;  %vm135_vm6 = vcmask 359744  }
  0x84   :  { %v44_v41 = vpop.permute.xlu0 %43   ;;  %v50_v42 = vpop.permute.xlu1 %49  }
  0x85   :  { %46 = vst.msk [vmem:[#allocation0] sm:$0x1] %vm45_vm7, %v44_v41   ;;  %v110_v43 = vpop.permute.xlu2 %109   ;;  %vm141_vm7 = vcmask 326944  }
  0x86   :  { %52 = vst.msk [vmem:[#allocation0] sm:$0x1] %vm51_vm8, %v50_v42   ;;  %vm147_vm8 = vcmask 294144  }
  0x87   :  { %58 = vst.msk [vmem:[#allocation0] sm:$0x1] %vm57_vm9, %v56_v34   ;;  %vm153_vm9 = vcmask 261344  }
  0x8c   :  { %v62_v44 = vpop.permute.xlu0 %61   ;;  %v68_v45 = vpop.permute.xlu1 %67  }
  0x8d   :  { %64 = vst.msk [vmem:[#allocation0] sm:$0x1] %vm63_vm10, %v62_v44   ;;  %v128_v46 = vpop.permute.xlu2 %127   ;;  %vm159_vm10 = vcmask 228544  }
  0x8e   :  { %70 = vst.msk [vmem:[#allocation0] sm:$0x1] %vm69_vm11, %v68_v45   ;;  %vm165_vm11 = vcmask 195744  }
  0x8f   :  { %76 = vst.msk [vmem:[#allocation0] sm:$0x1] %vm75_vm12, %v74_v37   ;;  %vm171_vm12 = vcmask 162944  }
  0x94   :  { %v80_v47 = vpop.permute.xlu0 %79   ;;  %v86_v48 = vpop.permute.xlu1 %85  }
  0x95   :  { %82 = vst.msk [vmem:[#allocation0] sm:$0x1] %vm81_vm13, %v80_v47   ;;  %v146_v49 = vpop.permute.xlu2 %145   ;;  %vm177_vm13 = vcmask 130144  }
  0x96   :  { %88 = vst.msk [vmem:[#allocation0] sm:$0x1] %vm87_vm14, %v86_v48   ;;  %vm183_vm14 = vcmask 97344  }
  0x97   :  { %94 = vst.msk [vmem:[#allocation0] sm:$0x1] %vm93_vm15, %v92_v40   ;;  %vm189_vm15 = vcmask 64544  }
  0x9c   :  { %v98_v50 = vpop.permute.xlu0 %97   ;;  %v104_v51 = vpop.permute.xlu1 %103  }
  0x9d   :  { %100 = vst.msk [vmem:[#allocation0] sm:$0x1] %vm99_vm0, %v98_v50   ;;  %v164_v52 = vpop.permute.xlu2 %163  }
  0x9e   :  { %106 = vst.msk [vmem:[#allocation0] sm:$0x1] %vm105_vm1, %v104_v51  }
  0x9f   :  { %112 = vst.msk [vmem:[#allocation0] sm:$0x1] %vm111_vm2, %v110_v43  }
  0xa4   :  { %v116_v53 = vpop.permute.xlu0 %115   ;;  %v122_v54 = vpop.permute.xlu1 %121  }
  0xa5   :  { %118 = vst.msk [vmem:[#allocation0] sm:$0x1] %vm117_vm3, %v116_v53   ;;  %v182_v55 = vpop.permute.xlu2 %181  }
  0xa6   :  { %124 = vst.msk [vmem:[#allocation0] sm:$0x1] %vm123_vm4, %v122_v54  }
  0xa7   :  { %130 = vst.msk [vmem:[#allocation0] sm:$0x1] %vm129_vm5, %v128_v46  }
  0xac   :  { %v134_v56 = vpop.permute.xlu0 %133   ;;  %v140_v57 = vpop.permute.xlu1 %139  }
  0xad   :  { %136 = vst.msk [vmem:[#allocation0] sm:$0x1] %vm135_vm6, %v134_v56  }
  0xae   :  { %142 = vst.msk [vmem:[#allocation0] sm:$0x1] %vm141_vm7, %v140_v57  }
  0xaf   :  { %148 = vst.msk [vmem:[#allocation0] sm:$0x1] %vm147_vm8, %v146_v49  }
  0xb4   :  { %v152_v58 = vpop.permute.xlu0 %151   ;;  %v158_v59 = vpop.permute.xlu1 %157  }
  0xb5   :  { %154 = vst.msk [vmem:[#allocation0] sm:$0x1] %vm153_vm9, %v152_v58  }
  0xb6   :  { %160 = vst.msk [vmem:[#allocation0] sm:$0x1] %vm159_vm10, %v158_v59  }
  0xb7   :  { %166 = vst.msk [vmem:[#allocation0] sm:$0x1] %vm165_vm11, %v164_v52  }
  0xbc   :  { %v170_v60 = vpop.permute.xlu0 %169   ;;  %v176_v61 = vpop.permute.xlu1 %175  }
  0xbd   :  { %172 = vst.msk [vmem:[#allocation0] sm:$0x1] %vm171_vm12, %v170_v60  }
  0xbe   :  { %178 = vst.msk [vmem:[#allocation0] sm:$0x1] %vm177_vm13, %v176_v61  }
  0xbf   :  { %184 = vst.msk [vmem:[#allocation0] sm:$0x1] %vm183_vm14, %v182_v55  }
  0xc4   :  { %v188_v62 = vpop.permute.xlu0 %187  }
  0xc5   :  { %190 = vst.msk [vmem:[#allocation0] sm:$0x1] %vm189_vm15, %v188_v62  }
  0xcc   :  { %v193_v63 = vld [vmem:[#allocation0] sm:$0x1] }
  0xcd   :  { %196 = vst [vmem:[%s400_s1] sm:$0x1] %v193_v63 }

// kernel: basic_block_forward.1
= control target key start
LH: loop header
LB: loop body
LE: loop exit
PB: predicated region body
PF: predicated region fallthrough
CT: control target
= control target key end

     0   :  { %vm41_vm0 = vcmask 1040384   ;;  %vm62_vm1 = vcmask 1046528   ;;  %vm46_vm2 = vsmask.f32 7424  ;;  %vm405_vm3 = vsmask.f32 256  ;;  %s1208_s1 = inlined_call_operand.vmem [shape: bf16[384,128], index: 1, kind: input, shape index: {}]   ;;  %s1209_s0 = inlined_call_operand.vmem [shape: f32[1,16,128], index: 0, kind: input, shape index: {}]   ;;  %s1210_s3 = inlined_call_operand.vmem [shape: f32[1,128], index: 3, kind: input, shape index: {}]   ;;  %s1211_s4 = inlined_call_operand.vmem [shape: f32[1,128], index: 4, kind: input, shape index: {}]   ;;  %s1212_s2 = inlined_call_operand.vmem [shape: bf16[384,128], index: 2, kind: input, shape index: {}]   ;;  %s1213_s5 = inlined_call_operand.vmem [shape: f32[1,128], index: 5, kind: input, shape index: {}]   ;;  %s1214_s6 = inlined_call_operand.vmem [shape: f32[1,128], index: 6, kind: input, shape index: {}]   ;;  %s1215_s7 = inlined_call_operand.vmem [shape: f32[1,16,128], index: 7, kind: output, shape index: {}]  }
   0x1   :  { %v925_v0 = vld [vmem:[%s1208_s1 + $0x38] sm:$0xff]  ;;  %v924_v3 = vld [vmem:[%s1208_s1 + $0x30] sm:$0xff]  ;;  %v923_v6 = vld [vmem:[%s1208_s1 + $0x28] sm:$0xff]  ;;  %vm410_vm5 = vsmask.f32 7938 }
   0x2   :  { %v933_v1 = vld [vmem:[%s1208_s1 + $0x78] sm:$0xff]  ;;  %324 = vmatpush.bf16.msra.mxu0 %v925_v0  ;;  %v932_v4 = vld [vmem:[%s1208_s1 + $0x70] sm:$0xff]  ;;  %v931_v7 = vld [vmem:[%s1208_s1 + $0x68] sm:$0xff] }
   0x3   :  { %v941_v2 = vld [vmem:[%s1208_s1 + $0xb8] sm:$0xff]  ;;  %342 = vmatpush.bf16.msra.mxu1 %v933_v1  ;;  %v940_v5 = vld [vmem:[%s1208_s1 + $0xb0] sm:$0xff]  ;;  %v939_v8 = vld [vmem:[%s1208_s1 + $0xa8] sm:$0xff] }
   0x4   :  { %360 = vmatpush.bf16.msra.mxu2 %v941_v2  ;;  %v1052_v9 = vld [vmem:[%s1209_s0] sm:$0xff]  ;;  %v1057_v10 = vld [vmem:[%s1209_s0 + $0x8] sm:$0xff]  ;;  %v921_v19 = vld [vmem:[%s1208_s1 + $0x18] sm:$0xff] }
   0x5   :  { %v33_v11 = vpack.c.bf16 %v1052_v9, %v1052_v9  ;;  %v34_v12 = vpack.c.bf16 %v1057_v10, %v1057_v10  ;;  %v922_v13 = vld [vmem:[%s1208_s1 + $0x20] sm:$0xff]  ;;  %v929_v20 = vld [vmem:[%s1208_s1 + $0x58] sm:$0xff]  ;;  %v920_v25 = vld [vmem:[%s1208_s1 + $0x10] sm:$0xff] }
   0x6   :  { %325 = vmatpush.bf16.msra.mxu0 %v924_v3  ;;  %v930_v14 = vld [vmem:[%s1208_s1 + $0x60] sm:$0xff]  ;;  %v937_v21 = vld [vmem:[%s1208_s1 + $0x98] sm:$0xff]  ;;  %v928_v26 = vld [vmem:[%s1208_s1 + $0x50] sm:$0xff] }
   0x7   :  { %343 = vmatpush.bf16.msra.mxu1 %v932_v4  ;;  %v938_v15 = vld [vmem:[%s1208_s1 + $0xa0] sm:$0xff]  ;;  %v37_v16 = vunpack.c.l.b16 %v33_v11  ;;  %v38_v17 = vunpack.c.l.b16 %v34_v12  ;;  %v936_v30 = vld [vmem:[%s1208_s1 + $0x90] sm:$0xff]  ;;  %v919_v39 = vld [vmem:[%s1208_s1 + $0x8] sm:$0xff] }
   0x8   :  { %361 = vmatpush.bf16.msra.mxu2 %v940_v5  ;;  %v927_v40 = vld [vmem:[%s1208_s1 + $0x48] sm:$0xff]  ;;  %v918_v55 = vld [vmem:[%s1208_s1] sm:$0xff]  ;;  %vm406_vm4 = vmand %vm41_vm0, %vm405_vm3 }
   0x9   :  { %v39_v18 = vpack.c.b16 %v38_v17, %v37_v16  ;;  %v935_v45 = vld [vmem:[%s1208_s1 + $0x88] sm:$0xff]  ;;  %v926_v56 = vld [vmem:[%s1208_s1 + $0x40] sm:$0xff]  ;;  %v949_v16 = vld [vmem:[%s1212_s2 + $0x38] sm:$0xff] }
   0xa   :  { %326 = vmatpush.bf16.msra.mxu0 %v923_v6  ;;  %v934_v58 = vld [vmem:[%s1208_s1 + $0x80] sm:$0xff]  ;;  %642 = vmatpush.bf16.msra.mxu3 %v949_v16  ;;  %v948_v17 = vld [vmem:[%s1212_s2 + $0x30] sm:$0xff]  ;;  %vm411_vm6 = vmand %vm41_vm0, %vm410_vm5 }
   0xb   :  { %344 = vmatpush.bf16.msra.mxu1 %v931_v7  ;;  %v40_v22 = vrot.slane %v39_v18, 7  ;;  %v947_v18 = vld [vmem:[%s1212_s2 + $0x28] sm:$0xff] }
   0xc   :  { %362 = vmatpush.bf16.msra.mxu2 %v939_v8 }
   0xd   :  { %v44_v23 = vsel %vm41_vm0, 0, %v40_v22  ;;  %v45_v24 = vsel %vm41_vm0, %v40_v22, 0  ;;  %v957_v22 = vld [vmem:[%s1212_s2 + $0x78] sm:$0xff] }
   0xe   :  { %327 = vmatpush.bf16.msra.mxu0 %v922_v13  ;;  %v47_v27 = vshrl.u32 %v44_v23, 16  ;;  %v49_v28 = vshll.u32 %v44_v23, 16  ;;  %v53_v29 = vshll.u32 %v45_v24, 16  ;;  %v63_v31 = vrot.slane %v44_v23, 1  ;;  %643 = vmatpush.bf16.msra.mxu3 %v948_v17 }
   0xf   :  { %345 = vmatpush.bf16.msra.mxu1 %v930_v14  ;;  %v64_v32 = vrot.slane %v45_v24, 1  ;;  %v57_v33 = vshrl.u32 %v45_v24, 16  ;;  %v72_v37 = vunpack.c.l.b16 %v45_v24  ;;  %v66_v46 = vunpack.c.l.b16 %v44_v23  ;;  %v944_v24 = vld [vmem:[%s1212_s2 + $0x10] sm:$0xff] }
  0x10   :  { %363 = vmatpush.bf16.msra.mxu2 %v938_v15  ;;  %v51_v34 = vrot.slane %v49_v28, 1  ;;  %v55_v35 = vrot.slane %v53_v29, 1  ;;  %v69_v47 = vunpack.c.h.b16 %v44_v23  ;;  %v964_v23 = vld [vmem:[%s1212_s2 + $0xb0] sm:$0xff]  ;;  %v963_v28 = vld [vmem:[%s1212_s2 + $0xa8] sm:$0xff] }
  0x11   :  { %v65_v36 = vsel %vm62_vm1, %v63_v31, %v64_v32  ;;  %v74_v38 = vunpack.c.l.b16 %v64_v32  ;;  %v943_v29 = vld [vmem:[%s1212_s2 + $0x8] sm:$0xff] }
  0x12   :  { %328 = vmatpush.bf16.msra.mxu0 %v921_v19  ;;  %v52_v41 = vor.u32 %v51_v34, %v47_v27  ;;  %v68_v42 = vunpack.c.l.b16 %v65_v36  ;;  %v71_v43 = vunpack.c.h.b16 %v65_v36  ;;  %v59_v44 = vor.u32 %v57_v33, %v55_v35  ;;  %644 = vmatpush.bf16.msra.mxu3 %v947_v18  ;;  %v946_v19 = vld [vmem:[%s1212_s2 + $0x20] sm:$0xff]  ;;  %v955_v31 = vld [vmem:[%s1212_s2 + $0x68] sm:$0xff] }
  0x13   :  { %346 = vmatpush.bf16.msra.mxu1 %v929_v20  ;;  %v80_v48 = vpack.c.b16 %v74_v38, %v74_v38  ;;  %v965_v20 = vld [vmem:[%s1212_s2 + $0xb8] sm:$0xff]  ;;  %v962_v33 = vld [vmem:[%s1212_s2 + $0xa0] sm:$0xff] }
  0x14   :  { %364 = vmatpush.bf16.msra.mxu2 %v937_v21  ;;  %v56_v49 = vsel %vm46_vm2, %v52_v41, %v55_v35  ;;  %v76_v50 = vpack.c.b16 %v68_v42, %v68_v42  ;;  %v78_v51 = vpack.c.b16 %v71_v43, %v71_v43  ;;  %v73_v52 = vunpack.c.l.b16 %v59_v44  ;;  %v945_v21 = vld [vmem:[%s1212_s2 + $0x18] sm:$0xff]  ;;  %v942_v34 = vld [vmem:[%s1212_s2] sm:$0xff] }
  0x15   :  { %v67_v53 = vunpack.c.l.b16 %v56_v49  ;;  %v70_v54 = vunpack.c.h.b16 %v56_v49  ;;  %92 = vst [vmem:[#allocation2 + $0x20] sm:$0x1] %v80_v48  ;;  %v978_v36 = vld [vmem:[%s1210_s3] ss:$0 sm:$0xff]  ;;  %v953_v44 = vld [vmem:[%s1212_s2 + $0x58] sm:$0xff]  ;;  %v952_v48 = vld [vmem:[%s1212_s2 + $0x50] sm:$0xff] }
  0x16   :  { %329 = vmatpush.bf16.msra.mxu0 %v920_v25  ;;  %88 = vst [vmem:[#allocation2 + $0x8] sm:$0xf] %v76_v50  ;;  %v79_v57 = vpack.c.b16 %v73_v52, %v72_v37  ;;  %645 = vmatpush.bf16.msra.mxu3 %v946_v19  ;;  %v956_v25 = vld [vmem:[%s1212_s2 + $0x70] sm:$0xff]  ;;  %v954_v37 = vld [vmem:[%s1212_s2 + $0x60] sm:$0xff] }
  0x17   :  { %347 = vmatpush.bf16.msra.mxu1 %v928_v26  ;;  %v75_v59 = vpack.c.b16 %v67_v53, %v66_v46  ;;  %v77_v60 = vpack.c.b16 %v70_v54, %v69_v47  ;;  %90 = vst [vmem:[#allocation2 + $0x14] sm:$0xf] %v78_v51  ;;  %v979_v42 = vld [vmem:[%s1211_s4] ss:$0 sm:$0xff]  ;;  %v960_v46 = vld [vmem:[%s1212_s2 + $0x90] sm:$0xff]  ;;  %v959_v51 = vld [vmem:[%s1212_s2 + $0x88] sm:$0xff] }
  0x18   :  { %365 = vmatpush.bf16.msra.mxu2 %v936_v30  ;;  %91 = vst [vmem:[#allocation2 + $0x18] sm:$0x11] %v79_v57 }
  0x19   :  { %87 = vst [vmem:[#allocation2] sm:$0xff] %v75_v59  ;;  %v958_v59 = vld [vmem:[%s1212_s2 + $0x80] sm:$0xff] }
  0x1a   :  { %330 = vmatpush.bf16.msra.mxu0 %v919_v39  ;;  %89 = vst [vmem:[#allocation2 + $0xc] sm:$0xff] %v77_v60  ;;  %646 = vmatpush.bf16.msra.mxu3 %v945_v21 }
  0x1b   :  { %348 = vmatpush.bf16.msra.mxu1 %v927_v40  ;;  %v961_v40 = vld [vmem:[%s1212_s2 + $0x98] sm:$0xff] }
  0x1c   :  { %366 = vmatpush.bf16.msra.mxu2 %v935_v45  ;;  %v104_v6 = vld [vmem:[#allocation2 + $0x20] sm:$0x1] }
  0x1d   :  { %v721_v61 = vld [vmem:[#allocation2 + $0x8] sm:$0xf]  ;;  %v167_v8 = vunpack.c.l.b16 %v104_v6 }
  0x1e   :  { %331 = vmatpush.bf16.msra.mxu0 %v918_v55  ;;  %v917_v62 = vld [vmem:[#allocation2 + $0x10] sm:$0xf0]  ;;  %647 = vmatpush.bf16.msra.mxu3 %v944_v24  ;;  %v951_v55 = vld [vmem:[%s1212_s2 + $0x48] sm:$0xff] }
  0x1f   :  { %349 = vmatpush.bf16.msra.mxu1 %v926_v56  ;;  %v722_v63 = vor.u32 %v917_v62, %v721_v61  ;;  %v103_v7 = vld [vmem:[#allocation2 + $0x18] sm:$0x11]  ;;  %v173_v13 = vpack.c.b16 %v167_v8, %v167_v8 }
  0x20   :  { %367 = vmatpush.bf16.msra.mxu2 %v934_v58  ;;  %v713_v0 = vld [vmem:[#allocation2] sm:$0xf]  ;;  %v915_v1 = vld [vmem:[#allocation2 + $0x4] sm:$0xf]  ;;  %v165_v11 = vunpack.c.l.b16 %v103_v7  ;;  %v166_v12 = vunpack.c.h.b16 %v103_v7 }
  0x21   :  { %v916_v2 = vld [vmem:[#allocation2 + $0x8] sm:$0xf0]  ;;  %v715_v3 = vld [vmem:[#allocation2 + $0xc] sm:$0xf0] }
  0x22   :  { %v714_v4 = vor.u32 %v916_v2, %v713_v0  ;;  %v718_v5 = vor.u32 %v915_v1, %v715_v3  ;;  %v171_v14 = vpack.c.b16 %v165_v11, %v165_v11  ;;  %v172_v15 = vpack.c.b16 %v166_v12, %v166_v12  ;;  %656 = vmatpush.bf16.msrb.mxu0 %v957_v22 }
  0x23   :  { %368 = vmatmul.bf16.vlgmr.msra.gmra.mxu2 %v722_v63  ;;  %670 = vmatpush.bf16.msrb.mxu1 %v965_v20  ;;  %v950_v63 = vld [vmem:[%s1212_s2 + $0x40] sm:$0xff] }
  0x24   :  { %332 = vmatmul.bf16.vlgmr.msra.gmra.mxu0 %v714_v4  ;;  %350 = vmatmul.bf16.vlgmr.msra.gmra.mxu1 %v718_v5 }
  0x25   :  { %648 = vmatpush.bf16.msra.mxu3 %v943_v29 }
  0x26   :  { %657 = vmatpush.bf16.msrb.mxu0 %v956_v25 }
  0x27   :  { %671 = vmatpush.bf16.msrb.mxu1 %v964_v23 }
  0x29   :  { %649 = vmatpush.bf16.msra.mxu3 %v942_v34  ;;  %v980_v34 = vld [vmem:[%s1213_s5] ss:$0 sm:$0xff] }
  0x2a   :  { %658 = vmatpush.bf16.msrb.mxu0 %v955_v31 }
  0x2b   :  { %672 = vmatpush.bf16.msrb.mxu1 %v963_v28 }
  0x2e   :  { %659 = vmatpush.bf16.msrb.mxu0 %v954_v37 }
  0x2f   :  { %673 = vmatpush.bf16.msrb.mxu1 %v962_v33 }
  0x32   :  { %660 = vmatpush.bf16.msrb.mxu0 %v953_v44 }
  0x33   :  { %373 = vmatmul.bf16.gmra.mxu2 %v173_v13  ;;  %674 = vmatpush.bf16.msrb.mxu1 %v961_v40 }
  0x34   :  { %337 = vmatmul.bf16.gmra.mxu0 %v171_v14  ;;  %355 = vmatmul.bf16.gmra.mxu1 %v172_v15 }
  0x36   :  { %661 = vmatpush.bf16.msrb.mxu0 %v952_v48 }
  0x37   :  { %675 = vmatpush.bf16.msrb.mxu1 %v960_v46 }
  0x3a   :  { %662 = vmatpush.bf16.msrb.mxu0 %v951_v55 }
  0x3b   :  { %676 = vmatpush.bf16.msrb.mxu1 %v959_v51 }
  0x3e   :  { %663 = vmatpush.bf16.msrb.mxu0 %v950_v63 }
  0x3f   :  { %677 = vmatpush.bf16.msrb.mxu1 %v958_v59 }
  0xa1   :  { %v333_v26 = vpop.f32.mrf.mxu0  ;;  %v351_v27 = vpop.f32.mrf.mxu1 }
  0xa2   :  { %v352_v30 = vadd.f32 %v351_v27, %v333_v26 }
  0xa6   :  { %v369_v32 = vpop.f32.mrf.mxu2 }
  0xa7   :  { %v370_v35 = vadd.f32 %v369_v32, %v352_v30 }
  0xa9   :  { %v335_v38 = vpop.f32.mrf.mxu0  ;;  %v353_v39 = vpop.f32.mrf.mxu1  ;;  %v382_v41 = vmul.f32 %v978_v36, %v370_v35 }
  0xaa   :  { %v354_v43 = vadd.f32 %v353_v39, %v335_v38 }
  0xab   :  { %v389_v49 = vadd.f32 %v979_v42, %v382_v41 }
  0xad   :  { %v392_v57 = vmax.f32 %v389_v49, 0.0 }
  0xae   :  { %v371_v45 = vpop.f32.mrf.mxu2 }
  0xaf   :  { %v372_v47 = vadd.f32 %v371_v45, %v354_v43 }
  0xb1   :  { %v383_v50 = vmul.f32 %v978_v36, %v372_v47  ;;  %v338_v53 = vpop.f32.mrf.mxu0  ;;  %v356_v54 = vpop.f32.mrf.mxu1 }
  0xb2   :  { %v357_v56 = vadd.f32 %v356_v54, %v338_v53 }
  0xb3   :  { %v390_v52 = vadd.f32 %v979_v42, %v383_v50 }
  0xb5   :  { %v393_v58 = vmax.f32 %v390_v52, 0.0 }
  0xb6   :  { %v374_v60 = vpop.f32.mrf.mxu2 }
  0xb7   :  { %v969_v61 = vpack.c.bf16 %v393_v58, %v392_v57  ;;  %v375_v62 = vadd.f32 %v374_v60, %v357_v56 }
  0xb9   :  { %970 = vst [vmem:[#allocation3] sm:$0xff] %v969_v61   ;;  %v384_v0 = vmul.f32 %v978_v36, %v375_v62  ;;  %v340_v2 = vpop.f32.mrf.mxu0  ;;  %v358_v3 = vpop.f32.mrf.mxu1  ;;  %v981_v36 = vld [vmem:[%s1214_s6] ss:$0 sm:$0xff] }
  0xbb   :  { %v391_v1 = vadd.f32 %v979_v42, %v384_v0 }
  0xbd   :  { %v394_v4 = vmax.f32 %v391_v1, 0.0 }
  0xbe   :  { %v376_v5 = vpop.f32.mrf.mxu2 }
  0xbf   :  { %v397_v6 = vpack.c.bf16 %v394_v4, %v394_v4 }
  0xc0   :  { %v407_v7 = vld [vmem:[#allocation3] sm:$0x1]  ;;  %v975_v14 = vld [vmem:[#allocation3] sm:$0xf0]  ;;  %v976_v15 = vld [vmem:[#allocation3] sm:$0xe] }
  0xc1   :  { %v408_v8 = vsel %vm406_vm4, 0, %v407_v7  ;;  %400 = vst [vmem:[#allocation3 + $0x8] sm:$0x1] %v397_v6  ;;  %v977_v19 = vor.u32 %v976_v15, %v975_v14 }
  0xc2   :  { %409 = vst [vmem:[#allocation3] sm:$0x1] %v408_v8 }
  0xc3   :  { %v446_v23 = vrot.slane %v977_v19, 1 }
  0xc8   :  { %v412_v11 = vld [vmem:[#allocation3 + $0x8] sm:$0x1] }
  0xc9   :  { %v413_v12 = vsel %vm411_vm6, 0, %v412_v11  ;;  %v972_v13 = vld [vmem:[#allocation3] sm:$0xff]  }
  0xca   :  { %414 = vst [vmem:[#allocation3 + $0x8] sm:$0x1] %v413_v12  ;;  %650 = vmatmul.bf16.vlgmr.msra.gmra.mxu3 %v972_v13  ;;  %v432_v16 = vshll.u32 %v972_v13, 16  ;;  %v430_v22 = vshrl.u32 %v972_v13, 16 }
  0xcc   :  { %v434_v20 = vrot.slane %v432_v16, 1 }
  0xce   :  { %v435_v26 = vor.u32 %v434_v20, %v430_v22 }
  0xd1   :  { %v417_v17 = vld [vmem:[#allocation3 + $0x8] sm:$0x1] }
  0xd2   :  { %v426_v18 = vunpack.c.l.b16 %v417_v17 }
  0xd4   :  { %v427_v21 = vpack.c.b16 %v426_v18, %v426_v18 }
  0xd6   :  { %v447_v24 = vrot.slane %v427_v21, 1  ;;  %v437_v25 = vshll.u32 %v427_v21, 16 }
  0xd8   :  { %v448_v27 = vsel %vm62_vm1, %v446_v23, %v447_v24  ;;  %v439_v28 = vrot.slane %v437_v25, 1 }
  0xd9   :  { %678 = vmatmul.bf16.vlgmr.msrb.gmra.mxu1 %v448_v27 }
  0xda   :  { %v440_v29 = vsel %vm46_vm2, %v435_v26, %v439_v28 }
  0xdb   :  { %664 = vmatmul.bf16.vlgmr.msrb.gmra.mxu0 %v440_v29 }
 0x14d   :  { %v651_v30 = vpop.f32.mrf.mxu3 }
 0x155   :  { %v653_v39 = vpop.f32.mrf.mxu3 }
 0x156   :  { %v679_v31 = vpop.f32.mrf.mxu1 }
 0x158   :  { %v665_v32 = vpop.f32.mrf.mxu0 }
 0x159   :  { %v666_v33 = vadd.f32 %v665_v32, %v651_v30 }
 0x15b   :  { %v680_v35 = vadd.f32 %v679_v31, %v666_v33 }
 0x15d   :  { %v688_v37 = vmul.f32 %v980_v34, %v680_v35 }
 0x15e   :  { %v681_v43 = vpop.f32.mrf.mxu1 }
 0x15f   :  { %v694_v38 = vadd.f32 %v981_v36, %v688_v37 }
 0x160   :  { %v667_v40 = vpop.f32.mrf.mxu0 }
 0x161   :  { %v699_v41 = vadd.f32 %v694_v38, %v1052_v9  ;;  %v668_v42 = vadd.f32 %v667_v40, %v653_v39 }
 0x163   :  { %v701_v44 = vmax.f32 %v699_v41, 0.0  ;;  %v682_v45 = vadd.f32 %v681_v43, %v668_v42 }
 0x165   :  { %703 = vst [vmem:[%s1215_s7] sm:$0xff] %v701_v44  ;;  %v689_v46 = vmul.f32 %v980_v34, %v682_v45 }
 0x167   :  { %v695_v47 = vadd.f32 %v981_v36, %v689_v46 }
 0x169   :  { %v700_v48 = vadd.f32 %v695_v47, %v1057_v10 }
 0x16b   :  { %v702_v49 = vmax.f32 %v700_v48, 0.0 }
 0x16d   :  { %704 = vst [vmem:[%s1215_s7 + $0x8] sm:$0xff] %v702_v49 }

</bundles_post_ra>
